<compile_context>
chip_gen: v6e
topology: v6e:2x2x1
jax: 0.10.0
libtpu: 0.0.40
codegen_flags: <defaults>
</compile_context>

<pallas_src>
import math

import jax
import jax.numpy as jnp
import numpy as np
from jax import lax
from jax.experimental import pallas as pl
from jax.experimental.pallas import tpu as pltpu

_HALF_LOG_2PI = 0.5 * math.log(2.0 * math.pi)
_LANES = 128
_VMEM_LIMIT_BYTES = 32 * 1024 * 1024     # explicit scoped VMEM (covers v5e's 16 MiB default too)
_PIPELINE_BUFFERS = 4                    # 2 inputs x 2 pipeline buffers


def _cdiv(a, b):
    return -(-a // b)


def _round_up(a, b):
    return _cdiv(a, b) * b


def _sublanes_for(dtype):
    # Sublane granularity depends on element packing (f32:8, bf16:16, int8/fp8:32).
    return {4: 8, 2: 16, 1: 32}.get(jnp.dtype(dtype).itemsize, 8)


def _num_tensorcores():
    """Best-effort TensorCores-per-chip (v7x / v4 megacore: 2, v5e/v6e: 1)."""
    try:
        kind = jax.devices()[0].device_kind.lower()
    except Exception:
        return 1
    return 2 if any(t in kind for t in ("v7", "7x", "v4")) else 1


def _finalize(sq_sum, n_elem, batch_elems, std, weight, name):
    """Scalar log-prob / mse algebra shared by the kernel and fallback paths."""
    inv_var = 1.0 / (std * std)
    total_logprob = (-0.5 * inv_var) * sq_sum - n_elem * (math.log(std) + _HALF_LOG_2PI)
    loss = -(total_logprob / float(batch_elems))          # sum over CHW, mean over batch dims
    # F.mse_loss default reduction='mean' over all elements.
    # TODO(synk): PyTorch detaches `mean` for the mse term; forward value is identical.
    mse = sq_sum / n_elem
    return {name: (weight, loss), name + "_mse": (0.0, mse)}


def _xla_sq_sum(pred_mean, next_obs):
    diff = next_obs.astype(jnp.float32) - pred_mean.astype(jnp.float32)
    return jnp.sum(diff * diff)


def _make_kernel(BC, bc_tile, acc_g, steps, n_split, total_blocks):
    num_full = BC // bc_tile                                 # blocks guaranteed fully in-bounds
    never_mask = (BC % bc_tile == 0) and (n_split * steps == total_blocks)
    groups = bc_tile // acc_g

    def kernel(pred_ref, obs_ref, acc_ref):
        k = pl.program_id(1)

        @pl.when(k == 0)
        def _init():
            acc_ref[...] = jnp.zeros(acc_ref.shape, acc_ref.dtype)

        diff = obs_ref[...].astype(jnp.float32) - pred_ref[...].astype(jnp.float32)
        sq = diff * diff                                     # (bc_tile, H, W) f32

        def _accum(vals):
            # Splitting the major-most axis is layout-free; summing over it is
            # pure elementwise VALU adds onto `acc_g` independent accumulator
            # slabs (short dependence chains, no cross-lane XLU on the hot path).
            part = jnp.sum(vals.reshape((groups, acc_g) + vals.shape[1:]), axis=0)
            acc_ref[...] += part[None]

        if never_mask:
            _accum(sq)
        else:
            linear = pl.program_id(0) * steps + k            # unclamped logical block id

            @pl.when(linear < num_full)
            def _fast():                                     # fully valid block: no mask cost
                _accum(sq)

            @pl.when(linear >= num_full)
            def _edge():
                # Masks the partial last block AND any clamped duplicate blocks
                # (their unclamped start is >= BC, so everything masks to zero).
                start = linear * bc_tile
                row = lax.broadcasted_iota(jnp.int32, sq.shape, 0) + start
                _accum(jnp.where(row < BC, sq, 0.0))

    return kernel


def observation_loss(pred_mean, next_obs, *, weight=1.0, std=1.0,
                     name="observation_loss",
                     target_block_bytes=4 * 1024 * 1024,
                     n_split=None,
                     min_kernel_bytes=1 * 1024 * 1024):
    """Pallas-backed ObservationLoss.forward.

    pred_mean, next_obs: [..., C, H, W] (NCHW, same as PyTorch).
    Returns a dict matching the PyTorch module's output structure.
    """
    assert pred_mean.shape == next_obs.shape
    assert pred_mean.ndim >= 3, "expects at least the (C, H, W) event dims"
    shape = pred_mean.shape
    N = int(np.prod(shape))
    batch_elems = int(np.prod(shape[:-3])) if len(shape) > 3 else 1
    itemsize = max(jnp.dtype(pred_mean.dtype).itemsize, jnp.dtype(next_obs.dtype).itemsize)

    # Small-input fallback: pallas_call launch overhead exceeds the whole reduction.
    if N * itemsize < min_kernel_bytes:
        return _finalize(_xla_sq_sum(pred_mean, next_obs), float(N),
                         batch_elems, std, weight, name)

    H, W = shape[-2], shape[-1]
    BC = N // (H * W)
    # Collapsing only the leading (major) dims is layout preserving: no HBM copy.
    pred3 = pred_mean.reshape(BC, H, W)
    obs3 = next_obs.reshape(BC, H, W)

    # --- tiling --------------------------------------------------------------
    sub = _sublanes_for(pred_mean.dtype)
    # VMEM-padded bytes of one (H, W) slice (lane/sublane padding included).
    slice_bytes = _round_up(H, sub) * _round_up(W, _LANES) * itemsize
    per_block_budget = min(target_block_bytes,
                           (_VMEM_LIMIT_BYTES - 8 * 1024 * 1024) // _PIPELINE_BUFFERS)
    if slice_bytes > per_block_budget:
        # TODO(synk): a single (H, W) slice exceeds the streaming tile budget;
        # fall back to XLA rather than sub-tiling the spatial dims.
        return _finalize(_xla_sq_sum(pred_mean, next_obs), float(N),
                         batch_elems, std, weight, name)

    bc_tile = max(1, per_block_budget // slice_bytes)
    bc_tile = min(bc_tile, BC)
    acc_g = 8 if bc_tile >= 8 else bc_tile        # number of independent accumulator slabs
    bc_tile = _round_up(bc_tile, acc_g)
    total_blocks = _cdiv(BC, bc_tile)

    if n_split is None:
        n_split = _num_tensorcores()
    n_split = max(1, min(int(n_split), total_blocks))
    steps = _cdiv(total_blocks, n_split)

    if n_split * steps == total_blocks:
        in_map = lambda c, k: (c * steps + k, 0, 0)
    else:
        # Clamp duplicate trailing blocks in-bounds; the kernel's edge mask
        # zeroes their contribution (unclamped linear index maps past BC).
        last = total_blocks - 1
        in_map = lambda c, k: (jnp.minimum(c * steps + k, last), 0, 0)
    out_map = lambda c, k: (c, 0, 0, 0)

    kernel = _make_kernel(BC, bc_tile, acc_g, steps, n_split, total_blocks)
    out_bytes = n_split * acc_g * H * W * 4

    partials = pl.pallas_call(
        kernel,
        out_shape=jax.ShapeDtypeStruct((n_split, acc_g, H, W), jnp.float32),
        grid_spec=pltpu.PrefetchScalarGridSpec(
            num_scalar_prefetch=0,
            grid=(n_split, steps),
            in_specs=[pl.BlockSpec((bc_tile, H, W), in_map),
                      pl.BlockSpec((bc_tile, H, W), in_map)],
            out_specs=pl.BlockSpec((1, acc_g, H, W), out_map),
        ),
        compiler_params=pltpu.CompilerParams(
            dimension_semantics=("parallel", "arbitrary"),
            vmem_limit_bytes=_VMEM_LIMIT_BYTES),
        cost_estimate=pl.CostEstimate(
            flops=3 * N, transcendentals=0,
            bytes_accessed=2 * N * itemsize + out_bytes),
    )(pred3, obs3)

    # Tiny finalize in the wrapper: one cross-lane reduce + scalar algebra.
    sq_sum = jnp.sum(partials, dtype=jnp.float32)
    return _finalize(sq_sum, float(N), batch_elems, std, weight, name)


def _reference(pred_mean, next_obs, std=1.0):
    """Pure-JAX reference of the PyTorch forward."""
    lp = (-0.5 * ((next_obs - pred_mean) / std) ** 2
          - math.log(std) - _HALF_LOG_2PI)
    b = int(np.prod(pred_mean.shape[:-3])) if pred_mean.ndim > 3 else 1
    loss = -jnp.sum(lp) / b
    mse = jnp.mean((pred_mean - next_obs) ** 2)
    return loss, mse


if __name__ == "__main__":
    # Deterministic "parameters": the module only holds weight (= 1.0).
    weight = 1.0
    key = jax.random.PRNGKey(0)

    slice33 = _round_up(33, 8) * _round_up(33, _LANES) * 4   # padded bytes of one 33x33 f32 slice

    # (shape, kwargs): cases 2-4 exercise the masked edge block, multi-step grid,
    # the 2-way split, and the clamped duplicate-block path; case 5 exercises the
    # small-input pure-JAX fallback.
    cases = [
        ((2, 4, 16, 16), dict(min_kernel_bytes=0)),
        ((2, 3, 33, 33), dict(min_kernel_bytes=0)),
        ((5, 3, 33, 33), dict(min_kernel_bytes=0, n_split=2,
                              target_block_bytes=2 * slice33)),
        ((5, 3, 33, 33), dict(min_kernel_bytes=0, n_split=2,
                              target_block_bytes=3 * slice33)),
        ((2, 4, 16, 16), dict()),                            # fallback path
    ]

    for shape, kwargs in cases:
        key, k1, k2 = jax.random.split(key, 3)
        pred_mean = jax.random.normal(k1, shape, dtype=jnp.float32)
        next_obs = jax.random.normal(k2, shape, dtype=jnp.float32)

        out = observation_loss(pred_mean, next_obs, weight=weight, **kwargs)
        loss = jax.block_until_ready(out["observation_loss"][1])
        mse = jax.block_until_ready(out["observation_loss_mse"][1])

        ref_loss, ref_mse = _reference(pred_mean, next_obs)
        np.testing.assert_allclose(np.asarray(loss), np.asarray(ref_loss),
                                   rtol=1e-5, atol=1e-5)
        np.testing.assert_allclose(np.asarray(mse), np.asarray(ref_mse),
                                   rtol=1e-5, atol=1e-6)

    print("KERNEL_OK")
</pallas_src>

<mosaic_0001>
module attributes {stable_mosaic.version = 11 : i64} {
  func.func @kernel(%arg0: i32, %arg1: i32, %arg2: memref<8x16x16xf32, #tpu.memory_space<vmem>>, %arg3: memref<8x16x16xf32, #tpu.memory_space<vmem>>, %arg4: memref<1x8x16x16xf32, #tpu.memory_space<vmem>>) attributes {dimension_semantics = [#tpu.dimension_semantics<parallel>, #tpu.dimension_semantics<arbitrary>], iteration_bounds = array<i64: 1, 1>, scalar_prefetch = 0 : i64, scratch_operands = 0 : i64, tpu.core_type = #tpu.core_type<tc>, window_params = [{transform_indices = @transform_0, window_bounds = array<i64: 8, 16, 16>}, {transform_indices = @transform_1, window_bounds = array<i64: 8, 16, 16>}, {transform_indices = @transform_2, window_bounds = array<i64: 1, 8, 16, 16>}]} {
    %c0_i32 = arith.constant 0 : i32
    %0 = arith.cmpi eq, %arg1, %c0_i32 : i32
    %1 = arith.extui %0 : i1 to i32
    %c0_i32_0 = arith.constant 0 : i32
    %2 = arith.cmpi ne, %1, %c0_i32_0 : i32
    scf.if %2 {
      %cst_14 = arith.constant 0.000000e+00 : f32
      %13 = vector.broadcast %cst_14 : f32 to vector<1x8x16x16xf32>
      %c0_15 = arith.constant 0 : index
      %c0_16 = arith.constant 0 : index
      %c0_17 = arith.constant 0 : index
      %c0_18 = arith.constant 0 : index
      %14 = vector.load %arg4[%c0_15, %c0_16, %c0_17, %c0_18] : memref<1x8x16x16xf32, #tpu.memory_space<vmem>>, vector<1x8x16x16xf32>
      tpu.vector_store %arg4[%c0_15, %c0_16, %c0_17, %c0_18], %13 {strides = array<i32>} : memref<1x8x16x16xf32, #tpu.memory_space<vmem>>, vector<1x8x16x16xf32>,
    } else {
    }
    %c0 = arith.constant 0 : index
    %c0_1 = arith.constant 0 : index
    %c0_2 = arith.constant 0 : index
    %3 = vector.load %arg3[%c0, %c0_1, %c0_2] : memref<8x16x16xf32, #tpu.memory_space<vmem>>, vector<8x16x16xf32>
    %c0_3 = arith.constant 0 : index
    %c0_4 = arith.constant 0 : index
    %c0_5 = arith.constant 0 : index
    %4 = vector.load %arg2[%c0_3, %c0_4, %c0_5] : memref<8x16x16xf32, #tpu.memory_space<vmem>>, vector<8x16x16xf32>
    %5 = arith.subf %3, %4 : vector<8x16x16xf32>
    %6 = arith.mulf %5, %5 : vector<8x16x16xf32>
    %7 = vector.shape_cast %6 : vector<8x16x16xf32> to vector<1x8x16x16xf32>
    %cst = arith.constant dense<0.000000e+00> : vector<8x16x16xf32>
    %8 = vector.multi_reduction <add>, %7, %cst [0] : vector<1x8x16x16xf32> to vector<8x16x16xf32>
    %c0_6 = arith.constant 0 : index
    %c0_7 = arith.constant 0 : index
    %c0_8 = arith.constant 0 : index
    %c0_9 = arith.constant 0 : index
    %9 = vector.load %arg4[%c0_6, %c0_7, %c0_8, %c0_9] : memref<1x8x16x16xf32, #tpu.memory_space<vmem>>, vector<1x8x16x16xf32>
    %10 = vector.shape_cast %8 : vector<8x16x16xf32> to vector<1x8x16x16xf32>
    %11 = arith.addf %9, %10 : vector<1x8x16x16xf32>
    %c0_10 = arith.constant 0 : index
    %c0_11 = arith.constant 0 : index
    %c0_12 = arith.constant 0 : index
    %c0_13 = arith.constant 0 : index
    %12 = vector.load %arg4[%c0_10, %c0_11, %c0_12, %c0_13] : memref<1x8x16x16xf32, #tpu.memory_space<vmem>>, vector<1x8x16x16xf32>
    tpu.vector_store %arg4[%c0_10, %c0_11, %c0_12, %c0_13], %11 {strides = array<i32>} : memref<1x8x16x16xf32, #tpu.memory_space<vmem>>, vector<1x8x16x16xf32>,
    return
  }
  func.func @transform_0(%arg0: i32, %arg1: i32) -> (i32, i32, i32) {
    %c1_i32 = arith.constant 1 : i32
    %0 = arith.muli %arg0, %c1_i32 : i32
    %1 = arith.addi %0, %arg1 : i32
    %c0_i32 = arith.constant 0 : i32
    %c0_i32_0 = arith.constant 0 : i32
    %c0_i32_1 = arith.constant 0 : i32
    return %1, %c0_i32, %c0_i32_0 : i32, i32, i32
  }
  func.func @transform_1(%arg0: i32, %arg1: i32) -> (i32, i32, i32) {
    %c1_i32 = arith.constant 1 : i32
    %0 = arith.muli %arg0, %c1_i32 : i32
    %1 = arith.addi %0, %arg1 : i32
    %c0_i32 = arith.constant 0 : i32
    %c0_i32_0 = arith.constant 0 : i32
    %c0_i32_1 = arith.constant 0 : i32
    return %1, %c0_i32, %c0_i32_0 : i32, i32, i32
  }
  func.func @transform_2(%arg0: i32, %arg1: i32) -> (i32, i32, i32, i32) {
    %c0_i32 = arith.constant 0 : i32
    %c0_i32_0 = arith.constant 0 : i32
    %c0_i32_1 = arith.constant 0 : i32
    %c0_i32_2 = arith.constant 0 : i32
    return %arg0, %c0_i32, %c0_i32_0, %c0_i32_1 : i32, i32, i32, i32
  }
}

</mosaic_0001>

<bundles_post_ra>
// kernel: tpu_custom_call.1
= control target key start
LH: loop header
LB: loop body
LE: loop exit
PB: predicated region body
PF: predicated region fallthrough
CT: control target
= control target key end

     0   :  { %7 = vsyncpa [#allocation3], 0  ;;  %s365_s0 = inlined_call_operand.hbm [shape: f32[8,16,16], index: 0, kind: input, shape index: {}]   ;;  %s366_s1 = inlined_call_operand.hbm [shape: f32[8,16,16], index: 1, kind: input, shape index: {}]   ;;  %s367_s2 = inlined_call_operand.hbm [shape: f32[1,8,16,16], index: 2, kind: output, shape index: {}]  }
   0x1   :  { %8 = vsyncpa [#allocation6], 0 }
   0x2   :  { %9 = vsyncpa [#allocation4], 0  ;;  %s294_s9 = smov [#allocation2]  }
   0x3   :  { %s20_s10 = sshll.u32 %s294_s9, 4  ;;  %s21_s10 = int_to_ptr.vmem [resolvable:$true] %s20_s10 }
   0x4   :  { %s236_s11 = scalar_lea.vmem %s21_s10, 2048  ;;  %p241_p1 = scmp.lt.s32.totalorder %s21_s10, %s21_s10 }
   0x5   :  { %p237_p0 = scmp.ne.s32.totalorder %s21_s10, %s236_s11  ;;  %p242_p2 = scmp.lt.s32.totalorder %s236_s11, %s236_s11 }
   0x7   :  { %p243_p3 = por %p242_p2, %p241_p1 }
   0x9   :  { %p244_p4 = pnand %p243_p3, %p237_p0 }
   0xb   :  { %247 = shalt.err (!%p244_p4)
}
   0xc   :  { %s295_s12 = smov 128   ;;  %s296_s13 = smov 8  }
   0xd   :  { %26 = dma.hbm_to_vmem [thread:$0]  %s365_s0, 2048, %s21_s10, [#allocation3], %s295_s12, %s295_s12, %s296_s13  }
   0xe   :  { %s297_s16 = smov [#allocation5]  }
   0xf   :  { %s37_s17 = sshll.u32 %s297_s16, 4  ;;  %s38_s17 = int_to_ptr.vmem [resolvable:$true] %s37_s17 }
  0x10   :  { %s256_s18 = scalar_lea.vmem %s38_s17, 2048  ;;  %p261_p6 = scmp.lt.s32.totalorder %s38_s17, %s38_s17 }
  0x11   :  { %p257_p5 = scmp.ne.s32.totalorder %s38_s17, %s256_s18  ;;  %p262_p7 = scmp.lt.s32.totalorder %s256_s18, %s256_s18 }
  0x13   :  { %p263_p8 = por %p262_p7, %p261_p6 }
  0x15   :  { %p264_p9 = pnand %p263_p8, %p257_p5 }
  0x17   :  { %267 = shalt.err (!%p264_p9)
}
  0x18   :  { %43 = dma.hbm_to_vmem [thread:$0]  %s366_s1, 2048, %s38_s17, [#allocation6], %s295_s12, %s295_s12, %s296_s13  }
  0x19   :  { %288 = dma.done.wait [#allocation3], 2048  }
  0x1a   :  { %289 = vsyncadd [#allocation3], 4294965248 }
  0x1b   :  { %290 = dma.done.wait [#allocation6], 2048  }
  0x1c   :  { %291 = vsyncadd [#allocation6], 4294965248  ;;  %vm58_vm0 = vcmask 130048   ;;  %v298_v0 = vmov 0.0   ;;  %v75_v1 = vld [vmem:[#allocation5] sm:$0xff]  ;;  %v76_v3 = vld [vmem:[#allocation5 + $0x8] sm:$0xff] }
  0x1d   :  { %59 = vst.msk [vmem:[#allocation7] sm:$0xff] %vm58_vm0, %v298_v0  ;;  %60 = vst.msk [vmem:[#allocation7 + $0x8] sm:$0xff] %vm58_vm0, %v298_v0  ;;  %v91_v2 = vld [vmem:[#allocation2] sm:$0xff]  ;;  %v92_v5 = vld [vmem:[#allocation2 + $0x8] sm:$0xff]  ;;  %s299_s0 = smov [#allocation7]  }
  0x1e   :  { %61 = vst.msk [vmem:[#allocation7 + $0x10] sm:$0xff] %vm58_vm0, %v298_v0  ;;  %62 = vst.msk [vmem:[#allocation7 + $0x18] sm:$0xff] %vm58_vm0, %v298_v0  ;;  %v107_v4 = vsub.f32 %v75_v1, %v91_v2  ;;  %v108_v7 = vsub.f32 %v76_v3, %v92_v5  ;;  %v77_v8 = vld [vmem:[#allocation5 + $0x10] sm:$0xff]  ;;  %v78_v13 = vld [vmem:[#allocation5 + $0x18] sm:$0xff]  ;;  %s209_s1 = sshll.u32 %s299_s0, 4  ;;  %s210_s1 = int_to_ptr.vmem [resolvable:$true] %s209_s1 }
  0x1f   :  { %63 = vst.msk [vmem:[#allocation7 + $0x20] sm:$0xff] %vm58_vm0, %v298_v0  ;;  %64 = vst.msk [vmem:[#allocation7 + $0x28] sm:$0xff] %vm58_vm0, %v298_v0  ;;  %v93_v9 = vld [vmem:[#allocation2 + $0x10] sm:$0xff]  ;;  %v94_v14 = vld [vmem:[#allocation2 + $0x18] sm:$0xff]  ;;  %s268_s21 = scalar_lea.vmem %s210_s1, 2048  ;;  %p273_p11 = scmp.lt.s32.totalorder %s210_s1, %s210_s1 }
  0x20   :  { %65 = vst.msk [vmem:[#allocation7 + $0x30] sm:$0xff] %vm58_vm0, %v298_v0  ;;  %66 = vst.msk [vmem:[#allocation7 + $0x38] sm:$0xff] %vm58_vm0, %v298_v0  ;;  %v123_v10 = vmul.f32 %v107_v4, %v107_v4  ;;  %v109_v12 = vsub.f32 %v77_v8, %v93_v9  ;;  %v124_v15 = vmul.f32 %v108_v7, %v108_v7  ;;  %v79_v18 = vld [vmem:[#allocation5 + $0x20] sm:$0xff]  ;;  %v80_v24 = vld [vmem:[#allocation5 + $0x28] sm:$0xff]  ;;  %p269_p10 = scmp.ne.s32.totalorder %s210_s1, %s268_s21  ;;  %p274_p12 = scmp.lt.s32.totalorder %s268_s21, %s268_s21 }
  0x21   :  { %67 = vst.msk [vmem:[#allocation7 + $0x40] sm:$0xff] %vm58_vm0, %v298_v0  ;;  %68 = vst.msk [vmem:[#allocation7 + $0x48] sm:$0xff] %vm58_vm0, %v298_v0  ;;  %v110_v17 = vsub.f32 %v78_v13, %v94_v14  ;;  %v95_v19 = vld [vmem:[#allocation2 + $0x20] sm:$0xff]  ;;  %v96_v25 = vld [vmem:[#allocation2 + $0x28] sm:$0xff] }
  0x22   :  { %69 = vst.msk [vmem:[#allocation7 + $0x50] sm:$0xff] %vm58_vm0, %v298_v0  ;;  %70 = vst.msk [vmem:[#allocation7 + $0x58] sm:$0xff] %vm58_vm0, %v298_v0  ;;  %v125_v21 = vmul.f32 %v109_v12, %v109_v12  ;;  %v111_v23 = vsub.f32 %v79_v18, %v95_v19  ;;  %v112_v29 = vsub.f32 %v80_v24, %v96_v25  ;;  %v81_v30 = vld [vmem:[#allocation5 + $0x30] sm:$0xff]  ;;  %v82_v36 = vld [vmem:[#allocation5 + $0x38] sm:$0xff]  ;;  %p275_p13 = por %p274_p12, %p273_p11 }
  0x23   :  { %71 = vst.msk [vmem:[#allocation7 + $0x60] sm:$0xff] %vm58_vm0, %v298_v0  ;;  %72 = vst.msk [vmem:[#allocation7 + $0x68] sm:$0xff] %vm58_vm0, %v298_v0  ;;  %v126_v27 = vmul.f32 %v110_v17, %v110_v17  ;;  %v97_v31 = vld [vmem:[#allocation2 + $0x30] sm:$0xff]  ;;  %v98_v37 = vld [vmem:[#allocation2 + $0x38] sm:$0xff] }
  0x24   :  { %73 = vst.msk [vmem:[#allocation7 + $0x70] sm:$0xff] %vm58_vm0, %v298_v0  ;;  %74 = vst.msk [vmem:[#allocation7 + $0x78] sm:$0xff] %vm58_vm0, %v298_v0  ;;  %v155_v6 = vld [vmem:[#allocation7] sm:$0xff]  ;;  %v156_v11 = vld [vmem:[#allocation7 + $0x8] sm:$0xff]  ;;  %v127_v33 = vmul.f32 %v111_v23, %v111_v23  ;;  %v113_v35 = vsub.f32 %v81_v30, %v97_v31  ;;  %v128_v39 = vmul.f32 %v112_v29, %v112_v29  ;;  %p276_p0 = pnand %p275_p13, %p269_p10 }
  0x25   :  { %v157_v16 = vld [vmem:[#allocation7 + $0x10] sm:$0xff]  ;;  %v171_v20 = vadd.f32 %v155_v6, %v123_v10  ;;  %v158_v22 = vld [vmem:[#allocation7 + $0x18] sm:$0xff]  ;;  %v172_v26 = vadd.f32 %v156_v11, %v124_v15  ;;  %v114_v41 = vsub.f32 %v82_v36, %v98_v37  ;;  %v83_v42 = vld [vmem:[#allocation5 + $0x40] sm:$0xff] }
  0x26   :  { %v159_v28 = vld [vmem:[#allocation7 + $0x20] sm:$0xff]  ;;  %v173_v32 = vadd.f32 %v157_v16, %v125_v21  ;;  %v160_v34 = vld [vmem:[#allocation7 + $0x28] sm:$0xff]  ;;  %v174_v38 = vadd.f32 %v158_v22, %v126_v27  ;;  %v129_v45 = vmul.f32 %v113_v35, %v113_v35  ;;  %v85_v54 = vld [vmem:[#allocation5 + $0x50] sm:$0xff] }
  0x27   :  { %188 = vst.msk [vmem:[#allocation7] sm:$0xff] %vm58_vm0, %v171_v20  ;;  %189 = vst.msk [vmem:[#allocation7 + $0x8] sm:$0xff] %vm58_vm0, %v172_v26  ;;  %v161_v40 = vld [vmem:[#allocation7 + $0x30] sm:$0xff]  ;;  %v99_v43 = vld [vmem:[#allocation2 + $0x40] sm:$0xff]  ;;  %v175_v44 = vadd.f32 %v159_v28, %v127_v33  ;;  %v176_v50 = vadd.f32 %v160_v34, %v128_v39  ;;  %v130_v51 = vmul.f32 %v114_v41, %v114_v41 }
  0x28   :  { %190 = vst.msk [vmem:[#allocation7 + $0x10] sm:$0xff] %vm58_vm0, %v173_v32  ;;  %v162_v46 = vld [vmem:[#allocation7 + $0x38] sm:$0xff]  ;;  %v115_v47 = vsub.f32 %v83_v42, %v99_v43  ;;  %v84_v48 = vld [vmem:[#allocation5 + $0x48] sm:$0xff]  ;;  %191 = vst.msk [vmem:[#allocation7 + $0x18] sm:$0xff] %vm58_vm0, %v174_v38  ;;  %v177_v56 = vadd.f32 %v161_v40, %v129_v45 }
  0x29   :  { %v100_v49 = vld [vmem:[#allocation2 + $0x48] sm:$0xff]  ;;  %v163_v52 = vld [vmem:[#allocation7 + $0x40] sm:$0xff]  ;;  %v101_v55 = vld [vmem:[#allocation2 + $0x50] sm:$0xff]  ;;  %192 = vst.msk [vmem:[#allocation7 + $0x20] sm:$0xff] %vm58_vm0, %v175_v44  ;;  %v178_v62 = vadd.f32 %v162_v46, %v130_v51 }
  0x2a   :  { %v116_v53 = vsub.f32 %v84_v48, %v100_v49  ;;  %v131_v57 = vmul.f32 %v115_v47, %v115_v47  ;;  %v164_v58 = vld [vmem:[#allocation7 + $0x48] sm:$0xff]  ;;  %v117_v59 = vsub.f32 %v85_v54, %v101_v55  ;;  %v86_v60 = vld [vmem:[#allocation5 + $0x58] sm:$0xff]  ;;  %193 = vst.msk [vmem:[#allocation7 + $0x28] sm:$0xff] %vm58_vm0, %v176_v50  ;;  %v165_v0 = vld [vmem:[#allocation7 + $0x50] sm:$0xff] }
  0x2b   :  { %v102_v61 = vld [vmem:[#allocation2 + $0x58] sm:$0xff]  ;;  %v87_v2 = vld [vmem:[#allocation5 + $0x60] sm:$0xff]  ;;  %194 = vst.msk [vmem:[#allocation7 + $0x30] sm:$0xff] %vm58_vm0, %v177_v56  ;;  %v88_v8 = vld [vmem:[#allocation5 + $0x68] sm:$0xff] }
  0x2c   :  { %v132_v63 = vmul.f32 %v116_v53, %v116_v53  ;;  %v118_v1 = vsub.f32 %v86_v60, %v102_v61  ;;  %v103_v3 = vld [vmem:[#allocation2 + $0x60] sm:$0xff]  ;;  %v179_v4 = vadd.f32 %v163_v52, %v131_v57  ;;  %v133_v5 = vmul.f32 %v117_v59, %v117_v59  ;;  %v166_v6 = vld [vmem:[#allocation7 + $0x58] sm:$0xff]  ;;  %v104_v9 = vld [vmem:[#allocation2 + $0x68] sm:$0xff]  ;;  %195 = vst.msk [vmem:[#allocation7 + $0x38] sm:$0xff] %vm58_vm0, %v178_v62 }
  0x2d   :  { %v119_v7 = vsub.f32 %v87_v2, %v103_v3  ;;  %v167_v12 = vld [vmem:[#allocation7 + $0x60] sm:$0xff]  ;;  %v120_v13 = vsub.f32 %v88_v8, %v104_v9  ;;  %v89_v14 = vld [vmem:[#allocation5 + $0x70] sm:$0xff]  ;;  %v168_v18 = vld [vmem:[#allocation7 + $0x68] sm:$0xff] }
  0x2e   :  { %v180_v10 = vadd.f32 %v164_v58, %v132_v63  ;;  %v134_v11 = vmul.f32 %v118_v1, %v118_v1  ;;  %v105_v15 = vld [vmem:[#allocation2 + $0x70] sm:$0xff]  ;;  %196 = vst.msk [vmem:[#allocation7 + $0x40] sm:$0xff] %vm58_vm0, %v179_v4  ;;  %v181_v16 = vadd.f32 %v165_v0, %v133_v5  ;;  %v90_v20 = vld [vmem:[#allocation5 + $0x78] sm:$0xff] }
  0x2f   :  { %v135_v17 = vmul.f32 %v119_v7, %v119_v7  ;;  %v121_v19 = vsub.f32 %v89_v14, %v105_v15  ;;  %v106_v21 = vld [vmem:[#allocation2 + $0x78] sm:$0xff]  ;;  %v136_v23 = vmul.f32 %v120_v13, %v120_v13  ;;  %v169_v24 = vld [vmem:[#allocation7 + $0x70] sm:$0xff] }
  0x30   :  { %197 = vst.msk [vmem:[#allocation7 + $0x48] sm:$0xff] %vm58_vm0, %v180_v10  ;;  %v182_v22 = vadd.f32 %v166_v6, %v134_v11  ;;  %v122_v25 = vsub.f32 %v90_v20, %v106_v21  ;;  %198 = vst.msk [vmem:[#allocation7 + $0x50] sm:$0xff] %vm58_vm0, %v181_v16  ;;  %v170_v28 = vld [vmem:[#allocation7 + $0x78] sm:$0xff] }
  0x31   :  { %v183_v26 = vadd.f32 %v167_v12, %v135_v17  ;;  %v137_v27 = vmul.f32 %v121_v19, %v121_v19  ;;  %v184_v29 = vadd.f32 %v168_v18, %v136_v23 }
  0x32   :  { %199 = vst.msk [vmem:[#allocation7 + $0x58] sm:$0xff] %vm58_vm0, %v182_v22  ;;  %v138_v30 = vmul.f32 %v122_v25, %v122_v25 }
  0x33   :  { %200 = vst.msk [vmem:[#allocation7 + $0x60] sm:$0xff] %vm58_vm0, %v183_v26  ;;  %v185_v31 = vadd.f32 %v169_v24, %v137_v27  ;;  %201 = vst.msk [vmem:[#allocation7 + $0x68] sm:$0xff] %vm58_vm0, %v184_v29 }
  0x34   :  { %v186_v32 = vadd.f32 %v170_v28, %v138_v30 }
  0x35   :  { %202 = vst.msk [vmem:[#allocation7 + $0x70] sm:$0xff] %vm58_vm0, %v185_v31 }
  0x36   :  { %203 = vst.msk [vmem:[#allocation7 + $0x78] sm:$0xff] %vm58_vm0, %v186_v32 }
  0x37   :  { %279 = shalt.err (!%p276_p0)
}
  0x38   :  { %215 = dma.vmem_to_hbm [thread:$0]  %s210_s1, 2048, %s367_s2, [#allocation4], %s295_s12, %s295_s12, %s296_s13  }
  0x39   :  { %292 = dma.done.wait [#allocation4], 2048  }
  0x3a   :  { %293 = vsyncadd [#allocation4], 4294965248 }
  0x3b   :  { %219 = vsyncpa [#allocation3], 1 }
  0x3c   :  { %220 = vsyncpa [#allocation6], 1 }
  0x3d   :  { %221 = vsyncpa [#allocation4], 1 }

</bundles_post_ra>
